<compile_context>
chip_gen: v5e
topology: v5e:2x2
jax: 0.10.0
libtpu: 0.0.40
codegen_flags: <defaults>
</compile_context>

<pallas_src>
import jax
import jax.numpy as jnp
from jax.experimental import pallas as pl
from jax.experimental.pallas import tpu as pltpu


def _make_kernel(tile_r, pr, D, rows_total, ragged):
    """Per-tile sum of squared differences -> one (pr, D) f32 partial block."""
    groups = tile_r // pr

    def _partial(sq):
        if groups == 1:
            return sq
        # Leading-axis sum over whole (pr, D) row-groups: pure VPU adds,
        # layout-compatible reshape (splits the sublane-major axis only).
        return jnp.sum(sq.reshape(groups, pr, D), axis=0)

    def kernel(x_ref, y_ref, o_ref):
        diff = x_ref[...].astype(jnp.float32) - y_ref[...].astype(jnp.float32)
        sq = diff * diff

        if not ragged:
            o_ref[...] = _partial(sq)
        else:
            i = pl.program_id(0)

            # Full tiles: mask-free path.
            @pl.when((i + 1) * tile_r <= rows_total)
            def _full():
                o_ref[...] = _partial(sq)

            # Final partial tile only: zero the unspecified padded rows with
            # a where (not a multiply) so garbage cannot poison the sum.
            @pl.when((i + 1) * tile_r > rows_total)
            def _tail():
                rows = i * tile_r + jax.lax.broadcasted_iota(
                    jnp.int32, sq.shape, 0)
                o_ref[...] = _partial(jnp.where(rows < rows_total, sq, 0.0))

    return kernel


def cropped_mse_loss(pred, target, crop, *, tile_bytes=2 << 20):
    """CroppedLoss2D.forward with loss_fxn = MSELoss (mean reduction)."""
    assert pred.shape == target.shape and pred.ndim == 4
    N, C, H, W = pred.shape
    top, left, ch, cw = (int(v) for v in crop)
    assert 0 < ch and 0 <= top and top + ch <= H, "crop rows out of bounds"
    assert 0 < cw and 0 <= left and left + cw <= W, "crop cols out of bounds"

    R, D = N * C, ch * cw

    # Crop rows AND columns up front; with allow_input_fusion below, XLA may
    # fuse this slice+reshape into the kernel's operand read instead of
    # materializing a cropped copy of both tensors in HBM.
    xr = pred[:, :, top:top + ch, left:left + cw].reshape(R, D)
    yr = target[:, :, top:top + ch, left:left + cw].reshape(R, D)

    itemsize = jnp.dtype(pred.dtype).itemsize
    row_bytes = D * itemsize

    # Row-tile sizing: ~tile_bytes per input block (capped so that
    # 2 inputs x 2 pipeline buffers stay well under every chip's scoped VMEM),
    # sublane-aligned, and never larger than R so block starts are always
    # in-bounds (only the standard ragged *final* block needs masking).
    # TODO(synk): crops so wide that a single 8-row tile exceeds VMEM would
    # need an additional grid axis over D; not needed for module-sized inputs.
    tile_bytes = min(int(tile_bytes), 6 << 20)
    cap = max(8, (tile_bytes // max(row_bytes, 1)) // 8 * 8)
    if R < 8:
        tile_r = pr = R                 # single block == full row extent
    else:
        tile_r = min(cap, (R // 8) * 8)  # multiple of 8, <= R
        pr = 8
    nt = (R + tile_r - 1) // tile_r
    ragged = (nt * tile_r) != R

    kernel = _make_kernel(tile_r, pr, D, R, ragged)
    data_spec = pl.BlockSpec((tile_r, D), lambda i: (i, 0))

    partials = pl.pallas_call(
        kernel,
        out_shape=jax.ShapeDtypeStruct((nt, pr, D), jnp.float32),
        grid=(nt,),
        in_specs=[data_spec, data_spec],
        out_specs=pl.BlockSpec((None, pr, D), lambda i: (i, 0, 0)),
        compiler_params=pltpu.CompilerParams(
            dimension_semantics=("parallel",),
            allow_input_fusion=[True, True],
            vmem_limit_bytes=32 * 1024 * 1024,
        ),
        cost_estimate=pl.CostEstimate(
            flops=3 * R * D,
            transcendentals=0,
            bytes_accessed=2 * R * D * itemsize + nt * pr * D * 4,
        ),
    )(xr, yr)

    return jnp.sum(partials) / float(N * C * ch * cw)


def _reference(pred, target, crop):
    top, left, ch, cw = crop
    d = (pred[:, :, top:top + ch, left:left + cw]
         - target[:, :, top:top + ch, left:left + cw]).astype(jnp.float32)
    return jnp.mean(d * d)


if __name__ == "__main__":
    key = jax.random.PRNGKey(0)
    ks = jax.random.split(key, 8)
    H = W = 16
    crop = (2, 3, 8, 10)  # (top, left, height, width)

    def check(pred, target, crop, **kw):
        loss = jax.block_until_ready(cropped_mse_loss(pred, target, crop, **kw))
        ref = _reference(pred, target, crop)
        assert jnp.allclose(loss, ref, rtol=1e-5, atol=1e-6), (loss, ref)

    # 1) Module-sized example: single tile, single partial.
    p1 = jax.random.normal(ks[0], (2, 4, H, W), jnp.float32)
    t1 = jax.random.normal(ks[1], (2, 4, H, W), jnp.float32)
    check(p1, t1, crop)

    # 2) Multi-tile parallel grid (tiny tile_bytes forces 8-row tiles -> 8 tiles).
    p2 = jax.random.normal(ks[2], (4, 16, H, W), jnp.float32)
    t2 = jax.random.normal(ks[3], (4, 16, H, W), jnp.float32)
    check(p2, t2, crop, tile_bytes=4096)

    # 3) Ragged final tile: R = 12 rows, 8-row tiles -> last block half garbage.
    p3 = jax.random.normal(ks[4], (3, 4, H, W), jnp.float32)
    t3 = jax.random.normal(ks[5], (3, 4, H, W), jnp.float32)
    check(p3, t3, crop, tile_bytes=4096)

    # 4) R < 8: single block equal to the full row extent.
    p4 = jax.random.normal(ks[6], (1, 4, H, W), jnp.float32)
    t4 = jax.random.normal(ks[7], (1, 4, H, W), jnp.float32)
    check(p4, t4, crop)

    print("KERNEL_OK")
</pallas_src>

<mosaic_0001>
module attributes {stable_mosaic.version = 11 : i64} {
  func.func @kernel(%arg0: i32, %arg1: memref<8x80xf32, #tpu.memory_space<vmem>>, %arg2: memref<8x80xf32, #tpu.memory_space<vmem>>, %arg3: memref<1x8x80xf32, #tpu.memory_space<vmem>>) attributes {dimension_semantics = [#tpu.dimension_semantics<parallel>], iteration_bounds = array<i64: 1>, scalar_prefetch = 0 : i64, scratch_operands = 0 : i64, tpu.core_type = #tpu.core_type<tc>, window_params = [{transform_indices = @transform_0, window_bounds = array<i64: 8, 80>}, {transform_indices = @transform_1, window_bounds = array<i64: 8, 80>}, {transform_indices = @transform_2, window_bounds = array<i64: 1, 8, 80>}]} {
    %c0 = arith.constant 0 : index
    %c0_0 = arith.constant 0 : index
    %0 = vector.load %arg1[%c0, %c0_0] : memref<8x80xf32, #tpu.memory_space<vmem>>, vector<8x80xf32>
    %c0_1 = arith.constant 0 : index
    %c0_2 = arith.constant 0 : index
    %1 = vector.load %arg2[%c0_1, %c0_2] : memref<8x80xf32, #tpu.memory_space<vmem>>, vector<8x80xf32>
    %2 = arith.subf %0, %1 : vector<8x80xf32>
    %3 = arith.mulf %2, %2 : vector<8x80xf32>
    %c0_3 = arith.constant 0 : index
    %c0_4 = arith.constant 0 : index
    %c0_5 = arith.constant 0 : index
    %4 = vector.load %arg3[%c0_3, %c0_4, %c0_5] : memref<1x8x80xf32, #tpu.memory_space<vmem>>, vector<1x8x80xf32>
    %5 = vector.shape_cast %4 : vector<1x8x80xf32> to vector<8x80xf32>
    %6 = vector.shape_cast %3 : vector<8x80xf32> to vector<1x8x80xf32>
    tpu.vector_store %arg3[%c0_3, %c0_4, %c0_5], %6 {strides = array<i32>} : memref<1x8x80xf32, #tpu.memory_space<vmem>>, vector<1x8x80xf32>,
    return
  }
  func.func @transform_0(%arg0: i32) -> (i32, i32) {
    %c0_i32 = arith.constant 0 : i32
    %c0_i32_0 = arith.constant 0 : i32
    return %arg0, %c0_i32 : i32, i32
  }
  func.func @transform_1(%arg0: i32) -> (i32, i32) {
    %c0_i32 = arith.constant 0 : i32
    %c0_i32_0 = arith.constant 0 : i32
    return %arg0, %c0_i32 : i32, i32
  }
  func.func @transform_2(%arg0: i32) -> (i32, i32, i32) {
    %c0_i32 = arith.constant 0 : i32
    %c0_i32_0 = arith.constant 0 : i32
    %c0_i32_1 = arith.constant 0 : i32
    return %arg0, %c0_i32, %c0_i32_0 : i32, i32, i32
  }
}

</mosaic_0001>

<bundles_post_ra>
// kernel: tpu_custom_call.1
= control target key start
LH: loop header
LB: loop body
LE: loop exit
PB: predicated region body
PF: predicated region fallthrough
CT: control target
= control target key end

     0   :  { %7 = vsyncpa [#allocation3], 0  ;;  %s172_s0 = inlined_call_operand.hbm [shape: f32[8,80], index: 0, kind: input, shape index: {}]   ;;  %s173_s1 = inlined_call_operand.hbm [shape: f32[8,80], index: 1, kind: input, shape index: {}]   ;;  %s174_s2 = inlined_call_operand.hbm [shape: f32[1,8,80], index: 2, kind: output, shape index: {}]  }
   0x1   :  { %8 = vsyncpa [#allocation6], 0 }
   0x2   :  { %9 = vsyncpa [#allocation4], 0  ;;  %s15_s11 = sshll.u32 %s172_s0, 4  ;;  %s145_s12 = smov [#allocation2]   ;;  %s16_s11 = int_to_ptr.hbm [resolvable:$true] %s15_s11 }
   0x3   :  { %s17_s13 = sshll.u32 %s145_s12, 4  ;;  %s26_s16 = sshll.u32 %s173_s1, 4  ;;  %s18_s13 = int_to_ptr.vmem [resolvable:$true] %s17_s13  ;;  %s27_s16 = int_to_ptr.hbm [resolvable:$true] %s26_s16 }
   0x4   :  { %20 = dma.hbm_to_vmem [thread:$0]  %s16_s11, 128, %s18_s13, [#allocation3]  }
   0x5   :  { %s146_s17 = smov [#allocation5]  }
   0x6   :  { %s28_s18 = sshll.u32 %s146_s17, 4  ;;  %s29_s18 = int_to_ptr.vmem [resolvable:$true] %s28_s18 }
   0x7   :  { %31 = dma.hbm_to_vmem [thread:$0]  %s27_s16, 128, %s29_s18, [#allocation6]  }
   0x8   :  { %139 = dma.done.wait [#allocation3], 128  }
   0x9   :  { %140 = vsyncadd [#allocation3], 4294967168 }
   0xa   :  { %141 = dma.done.wait [#allocation6], 128  }
   0xb   :  { %142 = vsyncadd [#allocation6], 4294967168  ;;  %v40_v0 = vld [vmem:[#allocation2] sm:$0xff]  ;;  %v41_v1 = vld [vmem:[#allocation5] sm:$0xff]  ;;  %s147_s0 = smov [#allocation7]   ;;  %s53_s22 = sshll.u32 %s174_s2, 4  ;;  %s54_s22 = int_to_ptr.hbm [resolvable:$true] %s53_s22 }
   0xc   :  { %s51_s19 = sshll.u32 %s147_s0, 4  ;;  %v42_v2 = vsub.f32 %v40_v0, %v41_v1  ;;  %vm44_vm0 = vcmask 654336   ;;  %s52_s19 = int_to_ptr.vmem [resolvable:$true] %s51_s19 }
   0xe   :  { %v43_v3 = vmul.f32 %v42_v2, %v42_v2 }
  0x10   :  { %45 = vst.msk [vmem:[#allocation7] sm:$0xff] %vm44_vm0, %v43_v3 }
  0x11   :  { %56 = dma.vmem_to_hbm [thread:$0]  %s52_s19, 128, %s54_s22, [#allocation4]  }
  0x12   :  { %143 = dma.done.wait [#allocation4], 128  }
  0x13   :  { %144 = vsyncadd [#allocation4], 4294967168 }
  0x14   :  { %61 = vsyncpa [#allocation3], 1 }
  0x15   :  { %62 = vsyncpa [#allocation6], 1 }
  0x16   :  { %63 = vsyncpa [#allocation4], 1 }

</bundles_post_ra>
